<compile_context>
chip_gen: v7x
topology: tpu7x:2x2x1
jax: 0.10.0
libtpu: 0.0.40
codegen_flags: <defaults>
</compile_context>

<pallas_src>
import math

import jax
import jax.numpy as jnp
from jax.experimental import pallas as pl
from jax.experimental.pallas import tpu as pltpu


def mlp_regression_kernel(xt_ref, w1_ref, b1_ref, w2_ref, b2_ref, out_ref):
    # xt_ref : (D, TB)  batch tile of x^T (batch on the lane axis)
    # w1_ref : (H, D)   first Linear weight, native (out, in) layout
    # b1_ref : (H, 1)   first Linear bias as a column
    # w2_ref : (H, 1)   second Linear weight as a column
    # b2_ref : (1, 1)   second Linear bias, SMEM scalar
    # out_ref: (1, TB)  lane-dense prediction row
    z = jnp.dot(w1_ref[...], xt_ref[...],
                preferred_element_type=jnp.float32)            # MXU, (H, TB)
    z = z + b1_ref[...]                                        # lane-broadcast
    # sigmoid(z) = 1 / (1 + exp(-z)); exp and reciprocal both run on the EUP.
    h1 = pl.reciprocal(1.0 + jnp.exp(-z), approx=False)        # (H, TB)
    # Second Linear has output width 1: VPU multiply + sublane reduction
    # instead of a 1/128-utilized MXU matmul.
    pred = jnp.sum(h1 * w2_ref[...], axis=0, keepdims=True)    # (1, TB)
    out_ref[...] = (pred + b2_ref[0, 0]).astype(out_ref.dtype)


def _pick_block_batch(n):
    # Prefer lane-dense batch tiles (multiples of 128).  512-row tiles feed
    # the MXU well without blowing VMEM; >=2 grid steps lets v7x use both TCs.
    for cand in (512, 256, 128):
        if n % cand == 0 and n // cand >= 2:
            return cand
    return n


def mlp_regression_forward(x, w1, b1, w2, b2, *, block_batch=None):
    """MLPRegression forward pass.

    Native PyTorch nn.Linear layouts:
      x: (N, D)   w1: (H, D)   b1: (H,)   w2: (1, H)   b2: (1,)
    Returns pred of shape (N,), float32.
    """
    n, d = x.shape
    h = w1.shape[0]
    if block_batch is None:
        block_batch = _pick_block_batch(n)
    if block_batch != n:
        assert n % block_batch == 0, "batch must divide evenly into tiles"
        assert block_batch % 128 == 0, (
            "batch tile must be a multiple of 128 (lane-dense output blocks)")

    # Layout plumbing only (no compute hoisting): batch -> lane axis, small
    # parameters as columns / an SMEM scalar.
    xt = x.T                                       # (D, N)
    b1c = b1.reshape(h, 1).astype(jnp.float32)     # (H, 1)
    w2c = w2.reshape(h, 1)                         # (H, 1)
    b2c = b2.reshape(1, 1).astype(jnp.float32)     # (1, 1) -> SMEM

    cost = pl.CostEstimate(
        flops=2 * n * d * h + 4 * n * h,
        transcendentals=n * h,
        bytes_accessed=(n * d + d * h) * x.dtype.itemsize + (2 * h + 1 + n) * 4,
    )

    out = pl.pallas_call(
        mlp_regression_kernel,
        out_shape=jax.ShapeDtypeStruct((1, n), jnp.float32),
        grid_spec=pltpu.PrefetchScalarGridSpec(
            num_scalar_prefetch=0,
            grid=(n // block_batch,),
            in_specs=[
                pl.BlockSpec((d, block_batch), lambda i: (0, i)),   # x^T tile
                pl.BlockSpec((h, d), lambda i: (0, 0)),             # W1 (resident)
                pl.BlockSpec((h, 1), lambda i: (0, 0)),             # b1 column
                pl.BlockSpec((h, 1), lambda i: (0, 0)),             # W2 column
                pl.BlockSpec(memory_space=pltpu.MemorySpace.SMEM),  # b2 scalar
            ],
            out_specs=pl.BlockSpec((1, block_batch), lambda i: (0, i)),
        ),
        compiler_params=pltpu.CompilerParams(
            dimension_semantics=("parallel",),
            vmem_limit_bytes=32 * 1024 * 1024,
        ),
        cost_estimate=cost,
    )(xt, w1, b1c, w2c, b2c)
    return out[0, :]


# ---------------------------------------------------------------------------
# Parameter init matching the PyTorch module (glorot weights, zero biases).
# ---------------------------------------------------------------------------
def glorot_uniform(key, shape):
    limit = math.sqrt(6.0 / (shape[0] + shape[1]))
    return jax.random.uniform(key, shape, minval=-limit, maxval=limit,
                              dtype=jnp.float32)


def init_params(key, input_size, hidden_size):
    k1, k2 = jax.random.split(key)
    w1 = glorot_uniform(k1, (hidden_size, input_size))   # (H, D), nn.Linear layout
    b1 = jnp.zeros((hidden_size,), jnp.float32)
    w2 = glorot_uniform(k2, (1, hidden_size))            # (1, H)
    b2 = jnp.zeros((1,), jnp.float32)
    return w1, b1, w2, b2


def reference_forward(x, w1, b1, w2, b2):
    hi = jax.lax.Precision.HIGHEST
    h1 = jax.nn.sigmoid(jnp.dot(x, w1.T, precision=hi) + b1)
    pred = jnp.dot(h1, w2.T, precision=hi) + b2
    return pred[:, 0]


if __name__ == "__main__":
    key = jax.random.PRNGKey(0)
    kx, kp, ky, kx2, kp2 = jax.random.split(key, 5)

    # Small shapes consistent with the module.
    batch, input_size, hidden_size = 8, 32, 32
    x = jax.random.normal(kx, (batch, input_size), dtype=jnp.float32)
    params = init_params(kp, input_size, hidden_size)

    pred = mlp_regression_forward(x, *params)
    pred = jax.block_until_ready(pred)
    ref = reference_forward(x, *params)
    assert pred.shape == (batch,)
    assert jnp.allclose(pred, ref, atol=1e-5, rtol=1e-5)

    # Larger case exercising the lane-dense output tiling (grid > 1 step).
    batch2, input2, hidden2 = 512, 128, 256
    x2 = jax.random.normal(kx2, (batch2, input2), dtype=jnp.float32)
    params2 = init_params(kp2, input2, hidden2)
    pred2 = mlp_regression_forward(x2, *params2)   # auto tile: 256 rows, grid=(2,)
    pred2 = jax.block_until_ready(pred2)
    ref2 = reference_forward(x2, *params2)
    assert pred2.shape == (batch2,)
    assert jnp.allclose(pred2, ref2, atol=1e-4, rtol=1e-4)

    # y-branch of the PyTorch forward (mse / mae) — plain-JAX glue, not hot path.
    y = jax.random.normal(ky, (batch,), dtype=jnp.float32)
    mse = jnp.mean((pred - y) ** 2)
    mae = jnp.mean(jnp.abs(pred - y))
    jax.block_until_ready((mse, mae))

    print("KERNEL_OK")
</pallas_src>

<mosaic_0001>
module attributes {stable_mosaic.version = 11 : i64} {
  func.func @mlp_regression_kernel(%arg0: i32, %arg1: memref<32x8xf32, #tpu.memory_space<vmem>>, %arg2: memref<32x32xf32, #tpu.memory_space<vmem>>, %arg3: memref<32x1xf32, #tpu.memory_space<vmem>>, %arg4: memref<32x1xf32, #tpu.memory_space<vmem>>, %arg5: memref<1x1xf32, #tpu.memory_space<smem>>, %arg6: memref<1x8xf32, #tpu.memory_space<vmem>>) attributes {dimension_semantics = [#tpu.dimension_semantics<parallel>], iteration_bounds = array<i64: 1>, scalar_prefetch = 0 : i64, scratch_operands = 0 : i64, tpu.core_type = #tpu.core_type<tc>, window_params = [{transform_indices = @transform_0, window_bounds = array<i64: 32, 8>}, {pipeline_mode = #tpu.pipeline_mode<synchronous>, transform_indices = @transform_1, window_bounds = array<i64: 32, 32>}, {pipeline_mode = #tpu.pipeline_mode<synchronous>, transform_indices = @transform_2, window_bounds = array<i64: 32, 1>}, {pipeline_mode = #tpu.pipeline_mode<synchronous>, transform_indices = @transform_3, window_bounds = array<i64: 32, 1>}, {transform_indices = @transform_4, window_bounds = array<i64: 1, 1>}, {transform_indices = @transform_5, window_bounds = array<i64: 1, 8>}]} {
    %c0 = arith.constant 0 : index
    %c0_0 = arith.constant 0 : index
    %0 = vector.load %arg2[%c0, %c0_0] : memref<32x32xf32, #tpu.memory_space<vmem>>, vector<32x32xf32>
    %c0_1 = arith.constant 0 : index
    %c0_2 = arith.constant 0 : index
    %1 = vector.load %arg1[%c0_1, %c0_2] : memref<32x8xf32, #tpu.memory_space<vmem>>, vector<32x8xf32>
    %cst = arith.constant dense<0.000000e+00> : vector<32x8xf32>
    %2 = tpu.matmul %0, %1, %cst {dimension_numbers = #tpu.dot_dimension_numbers<[1], [0], [0], [1], [0, 0, 1, 1], [], []>} : vector<32x32xf32>, vector<32x8xf32>, vector<32x8xf32> -> vector<32x8xf32>
    %c0_3 = arith.constant 0 : index
    %c0_4 = arith.constant 0 : index
    %3 = vector.load %arg3[%c0_3, %c0_4] : memref<32x1xf32, #tpu.memory_space<vmem>>, vector<32x1xf32>
    %4 = vector.broadcast %3 : vector<32x1xf32> to vector<32x8xf32>
    %5 = arith.addf %2, %4 : vector<32x8xf32>
    %cst_5 = arith.constant 0.000000e+00 : f32
    %6 = vector.broadcast %cst_5 : f32 to vector<32x8xf32>
    %7 = arith.subf %6, %5 : vector<32x8xf32>
    %8 = math.exp %7 : vector<32x8xf32>
    %cst_6 = arith.constant 1.000000e+00 : f32
    %9 = vector.broadcast %cst_6 : f32 to vector<32x8xf32>
    %10 = arith.addf %9, %8 : vector<32x8xf32>
    %11 = tpu.reciprocal %10 : vector<32x8xf32> -> vector<32x8xf32>
    %c0_7 = arith.constant 0 : index
    %c0_8 = arith.constant 0 : index
    %12 = vector.load %arg4[%c0_7, %c0_8] : memref<32x1xf32, #tpu.memory_space<vmem>>, vector<32x1xf32>
    %13 = vector.broadcast %12 : vector<32x1xf32> to vector<32x8xf32>
    %14 = arith.mulf %11, %13 : vector<32x8xf32>
    %cst_9 = arith.constant dense<0.000000e+00> : vector<8xf32>
    %15 = vector.multi_reduction <add>, %14, %cst_9 [0] : vector<32x8xf32> to vector<8xf32>
    %16 = vector.shape_cast %15 : vector<8xf32> to vector<1x8xf32>
    %c0_10 = arith.constant 0 : index
    %c0_11 = arith.constant 0 : index
    %17 = memref.load %arg5[%c0_10, %c0_11] : memref<1x1xf32, #tpu.memory_space<smem>>
    %18 = vector.broadcast %17 : f32 to vector<1x8xf32>
    %19 = arith.addf %16, %18 : vector<1x8xf32>
    %c0_12 = arith.constant 0 : index
    %c0_13 = arith.constant 0 : index
    %20 = vector.load %arg6[%c0_12, %c0_13] : memref<1x8xf32, #tpu.memory_space<vmem>>, vector<1x8xf32>
    tpu.vector_store %arg6[%c0_12, %c0_13], %19 {strides = array<i32>} : memref<1x8xf32, #tpu.memory_space<vmem>>, vector<1x8xf32>,
    return
  }
  func.func @transform_0(%arg0: i32) -> (i32, i32) {
    %c0_i32 = arith.constant 0 : i32
    %c0_i32_0 = arith.constant 0 : i32
    return %c0_i32, %arg0 : i32, i32
  }
  func.func @transform_1(%arg0: i32) -> (i32, i32) {
    %c0_i32 = arith.constant 0 : i32
    %c0_i32_0 = arith.constant 0 : i32
    %c0_i32_1 = arith.constant 0 : i32
    return %c0_i32, %c0_i32_0 : i32, i32
  }
  func.func @transform_2(%arg0: i32) -> (i32, i32) {
    %c0_i32 = arith.constant 0 : i32
    %c0_i32_0 = arith.constant 0 : i32
    %c0_i32_1 = arith.constant 0 : i32
    return %c0_i32, %c0_i32_0 : i32, i32
  }
  func.func @transform_3(%arg0: i32) -> (i32, i32) {
    %c0_i32 = arith.constant 0 : i32
    %c0_i32_0 = arith.constant 0 : i32
    %c0_i32_1 = arith.constant 0 : i32
    return %c0_i32, %c0_i32_0 : i32, i32
  }
  func.func @transform_4(%arg0: i32) -> (i32, i32) {
    %c0_i32 = arith.constant 0 : i32
    %c0_i32_0 = arith.constant 0 : i32
    %c0_i32_1 = arith.constant 0 : i32
    return %c0_i32, %c0_i32_0 : i32, i32
  }
  func.func @transform_5(%arg0: i32) -> (i32, i32) {
    %c0_i32 = arith.constant 0 : i32
    %c0_i32_0 = arith.constant 0 : i32
    return %c0_i32, %arg0 : i32, i32
  }
}

</mosaic_0001>

<bundles_post_ra>
// kernel: tpu_custom_call.1
= control target key start
LH: loop header
LB: loop body
LE: loop exit
PB: predicated region body
PF: predicated region fallthrough
CT: control target
= control target key end

     0   :  { %vm54_vm0 = vcmask 261120   ;;  %v315_v7 = vmov 0   ;;  %s414_s0 = inlined_call_operand.vmem [shape: f32[32,8], index: 0, kind: input, shape index: {}]   ;;  %s415_s1 = inlined_call_operand.vmem [shape: f32[32,32], index: 1, kind: input, shape index: {}]   ;;  %s416_s2 = inlined_call_operand.vmem [shape: f32[32,1], index: 2, kind: input, shape index: {}]   ;;  %s417_s3 = inlined_call_operand.vmem [shape: f32[32,1], index: 3, kind: input, shape index: {}]   ;;  %s418_s4 = inlined_call_operand.<no memory space> [shape: f32[1,1], index: 4, kind: input, shape index: {}]   ;;  %s419_s5 = inlined_call_operand.hbm [shape: f32[1,8], index: 5, kind: output, shape index: {}]  }
   0x1   :  { %v26_v0 = vld [vmem:[%s414_s0] sm:$0xff]  ;;  %v27_v1 = vld [vmem:[%s414_s0 + $0x8] sm:$0xff]  ;;  %v28_v2 = vld [vmem:[%s414_s0 + $0x10] sm:$0xff]  ;;  %273 = vset.pattern.permute.xlu0 %v315_v7  ;;  %274 = vset.pattern.permute.xlu1 %v315_v7 }
   0x2   :  { %v259_v3 = vpack.c.bf16 %v27_v1, %v26_v0  ;;  %v29_v4 = vld [vmem:[%s414_s0 + $0x18] sm:$0xff]  ;;  %v22_v5 = vld [vmem:[%s415_s1] sm:$0xff]  ;;  %v24_v6 = vld [vmem:[%s415_s1 + $0x10] sm:$0xff] }
   0x3   :  { %v263_v8 = vpack.c.bf16 %v29_v4, %v28_v2  ;;  %253 = vmatprep.mubr.msk.f32.mxu0 %vm54_vm0, %v22_v5  ;;  %256 = vmatprep.mubr.msk.f32.mxu1 %vm54_vm0, %v24_v6  ;;  %v30_v9 = vld [vmem:[%s416_s2] sm:$0xff]  ;;  %v32_v10 = vld [vmem:[%s416_s2 + $0x10] sm:$0xff] }
   0x4   :  { %260 = vmatprep.subr.bf16.mxu0 %v259_v3  ;;  %267 = vmatprep.subr.bf16.mxu1 %v259_v3 }
   0x5   :  { %262 = vmatpush3.bf16.msra.mxu0 %v259_v3  ;;  %269 = vmatpush3.bf16.msra.mxu1 %v259_v3 }
   0x6   :  { %264 = vmatprep.subr.bf16.mxu0 %v263_v8  ;;  %268 = vmatprep.subr.bf16.mxu1 %v263_v8 }
   0x7   :  { %11 = vsyncpa [#allocation4], 0  ;;  %36 = vperm.xlu0 %273, %v30_v9   ;;  %46 = vperm.xlu1 %274, %v32_v10   ;;  %v31_v11 = vld [vmem:[%s416_s2 + $0x8] sm:$0xff]  ;;  %v33_v12 = vld [vmem:[%s416_s2 + $0x18] sm:$0xff]  ;;  %vm200_vm1 = vcmask 64512   ;;  %v215_v7 = vstv %s418_s4  ;;  %s316_s23 = smov [#allocation3]  }
   0x8   :  { %v23_v13 = vld [vmem:[%s415_s1 + $0x8] sm:$0xff]  ;;  %v25_v14 = vld [vmem:[%s415_s1 + $0x18] sm:$0xff]  ;;  %v172_v15 = vld [vmem:[%s417_s3] sm:$0xff]  ;;  %s225_s24 = sshll.u32 %s316_s23, 4  ;;  %vm217_vm2 = vcmask 57344   ;;  %s226_s24 = int_to_ptr.vmem [resolvable:$true] %s225_s24 }
   0x9   :  { %266 = vmatpush3.bf16.msra.mxu0 %v263_v8  ;;  %270 = vmatpush3.bf16.msra.mxu1 %v263_v8  ;;  %v173_v16 = vld [vmem:[%s417_s3 + $0x8] sm:$0xff]  ;;  %v174_v17 = vld [vmem:[%s417_s3 + $0x10] sm:$0xff]  ;;  %v175_v18 = vld [vmem:[%s417_s3 + $0x18] sm:$0xff]  ;;  %s291_s25 = scalar_lea.vmem %s226_s24, 16  ;;  %s295_s26 = scalar_lea.vmem %s226_s24, 32 }
   0xa   :  { %p292_p0 = scmp.ne.s32.totalorder %s226_s24, %s291_s25  ;;  %p296_p1 = scmp.lt.s32.totalorder %s226_s24, %s226_s24 }
   0xb   :  { %41 = vperm.xlu0 %273, %v31_v11   ;;  %51 = vperm.xlu1 %274, %v33_v12   ;;  %p297_p2 = scmp.lt.s32.totalorder %s295_s26, %s291_s25 }
   0xc   :  { %254 = vmatmul.mubr.msk.f32.vlgmr.msra.gmra.mrb[0].mxu0 %vm54_vm0, %v23_v13  ;;  %257 = vmatmul.mubr.msk.f32.vlgmr.msra.gmra.mrb[0].mxu1 %vm54_vm0, %v25_v14 }
   0xd   :  { %p298_p3 = por %p297_p2, %p296_p1 }
   0xf   :  { %178 = vperm.xlu0 %273, %v172_v15   ;;  %183 = vperm.xlu1 %274, %v173_v16   ;;  %p299_p4 = pnand %p298_p3, %p292_p0 }
  0x13   :  { %188 = vperm.xlu0 %273, %v174_v17   ;;  %193 = vperm.xlu1 %274, %v175_v18  }
  0x86   :  { %v37_v19 = vpop.permute.xlu0 %36  ;;  %v47_v20 = vpop.permute.xlu1 %46 }
  0x8a   :  { %v42_v21 = vpop.permute.xlu0 %41  ;;  %v52_v22 = vpop.permute.xlu1 %51 }
  0x8e   :  { %v179_v47 = vpop.permute.xlu0 %178  ;;  %v184_v48 = vpop.permute.xlu1 %183 }
  0x92   :  { %v189_v54 = vpop.permute.xlu0 %188  ;;  %v194_v57 = vpop.permute.xlu1 %193 }
  0xdf   :  { %v255_v23 = vpop.f32.mrb[0].mxu0  ;;  %v258_v24 = vpop.f32.mrb[0].mxu1 }
  0xe0   :  { %v139_v25 = vadd.f32 %v255_v23, %v42_v21  ;;  %v149_v26 = vadd.f32 %v258_v24, %v52_v22  ;;  %v133_v27 = vpop.f32.mrb[1].mxu0  ;;  %v143_v28 = vpop.f32.mrb[1].mxu1 }
  0xe1   :  { %v134_v29 = vadd.f32 %v133_v27, %v37_v19  ;;  %v144_v30 = vadd.f32 %v143_v28, %v47_v20 }
  0xe2   :  { %v153_v31 = vsub.f32 0.0, %v139_v25  ;;  %v155_v32 = vsub.f32 0.0, %v149_v26 }
  0xe3   :  { %v152_v33 = vsub.f32 0.0, %v134_v29  ;;  %v154_v34 = vsub.f32 0.0, %v144_v30 }
  0xe4   :  { %v158_v35 = vmul.f32 1.442695, %v153_v31  ;;  %v162_v36 = vmul.f32 1.442695, %v155_v32 }
  0xe5   :  { %v156_v37 = vmul.f32 1.442695, %v152_v33  ;;  %v160_v38 = vmul.f32 1.442695, %v154_v34 }
  0xe6   :  { %275 = vpow2.f32 %v158_v35 }
  0xe7   :  { %277 = vpow2.f32 %v162_v36 }
  0xe8   :  { %279 = vpow2.f32 %v156_v37 }
  0xe9   :  { %281 = vpow2.f32 %v160_v38 }
  0xf0   :  { %v276_v39 = vpop.eup %275 }
  0xf1   :  { %v278_v40 = vpop.eup %277  ;;  %v165_v41 = vadd.f32 1.0, %v276_v39 }
  0xf2   :  { %v280_v42 = vpop.eup %279  ;;  %v167_v43 = vadd.f32 1.0, %v278_v40 }
  0xf3   :  { %v282_v44 = vpop.eup %281  ;;  %283 = vrcp.f32 %v165_v41  ;;  %v164_v45 = vadd.f32 1.0, %v280_v42 }
  0xf4   :  { %285 = vrcp.f32 %v167_v43  ;;  %v166_v46 = vadd.f32 1.0, %v282_v44 }
  0xf5   :  { %287 = vrcp.f32 %v164_v45 }
  0xf6   :  { %289 = vrcp.f32 %v166_v46 }
  0xfd   :  { %v284_v49 = vpop.eup %283 }
  0xfe   :  { %v286_v50 = vpop.eup %285  ;;  %v197_v51 = vmul.f32 %v284_v49, %v184_v48 }
  0xff   :  { %v288_v52 = vpop.eup %287  ;;  %v199_v59 = vmul.f32 %v286_v50, %v194_v57 }
 0x100   :  { %v290_v53 = vpop.eup %289  ;;  %v202_v55 = vsel %vm200_vm1, %v197_v51, 0.0  ;;  %v196_v56 = vmul.f32 %v288_v52, %v179_v47 }
 0x101   :  { %v198_v58 = vmul.f32 %v290_v53, %v189_v54  ;;  %v206_v0 = vsel %vm200_vm1, %v199_v59, 0.0 }
 0x102   :  { %v201_v60 = vsel %vm200_vm1, %v196_v56, 0.0 }
 0x103   :  { %v203_v61 = vadd.f32 %v202_v55, %v201_v60  ;;  %v204_v62 = vsel %vm200_vm1, %v198_v58, 0.0 }
 0x105   :  { %v205_v63 = vadd.f32 %v204_v62, %v203_v61 }
 0x107   :  { %v207_v1 = vadd.f32 %v206_v0, %v205_v63 }
 0x109   :  { %v208_v2 = vrot.slane %v207_v1, 4 }
 0x10b   :  { %v209_v3 = vadd.f32 %v208_v2, %v207_v1 }
 0x10d   :  { %v210_v4 = vrot.slane %v209_v3, 2 }
 0x10f   :  { %v211_v5 = vadd.f32 %v210_v4, %v209_v3 }
 0x111   :  { %v212_v6 = vrot.slane %v211_v5, 1 }
 0x113   :  { %v213_v8 = vadd.f32 %v212_v6, %v211_v5 }
 0x115   :  { %v216_v9 = vadd.f32 %v215_v7, %v213_v8 }
 0x117   :  { %218 = vst.msk [vmem:[#allocation3] sm:$0x1] %vm217_vm2, %v216_v9 }
 0x118   :  { %302 = shalt.err (!%p299_p4)
}
 0x119   :  { %s303_s29 = scalar_lea.hbm %s419_s5, 16 }
 0x11a   :  { %p304_p5 = scmp.ne.s32.totalorder %s419_s5, %s303_s29  ;;  %p307_p6 = scmp.lt.u32.totalorder %s303_s29, %s419_s5 }
 0x11c   :  { %p309_p7 = pnand %p307_p6, %p304_p5 }
 0x11e   :  { %312 = shalt.err (!%p309_p7)
}
 0x11f   :  { %228 = dma.vmem_to_hbm [thread:$0]  %s226_s24, 16, %s419_s5, [#allocation4]  }
 0x120   :  { %313 = dma.done.wait [#allocation4], 16  }
 0x121   :  { %314 = vsyncadd [#allocation4], 4294967280 }
 0x122   :  { %232 = vsyncpa [#allocation4], 1 }

</bundles_post_ra>
